<compile_context>
chip_gen: v7x
topology: tpu7x:2x2x1
jax: 0.10.0
libtpu: 0.0.40
codegen_flags: <defaults>
</compile_context>

<pallas_src>
import functools

import jax
import jax.numpy as jnp
from jax.experimental import pallas as pl
from jax.experimental.pallas import tpu as pltpu

_SUB = 8                     # sublane rows of a vreg
_LANE = 128                  # lane width of a vreg
_MIN_TILE = _SUB * _LANE     # 1024: minimal fully lane-dense batch tile


def _round_up(x, m):
    return (x + m - 1) // m * m


def _make_kernel(field_sizes):
    """Builds the kernel body; field_sizes is a static tuple of per-field vocab sizes."""

    def kernel(tab_ref, bias_ref, idx_ref, out_ref):
        # tab_ref : SMEM (F, E) f32   w-scaled embedding tables (resident, scalar reads)
        # bias_ref: SMEM (1,)   f32   linear bias
        # idx_ref : VMEM (F, 8, b_lane) int32  batch folded onto (sublane, lane)
        # out_ref : VMEM (8, b_lane) f32       sigmoid probabilities
        acc = jnp.full(out_ref.shape, bias_ref[0], dtype=jnp.float32)
        for f, e_size in enumerate(field_sizes):
            idx_f = idx_ref[f]                     # (8, b_lane) int32, dense batch
            # TODO(synk): for large vocabularies (E >~ a few thousand) replace this
            # O(E) select-scan with a true gather (jnp.take on a VMEM-resident table,
            # or a PrefetchScalarGridSpec / pl.Element row gather).
            for e in range(e_size):                # static unroll; compare vs immediate
                acc = acc + jnp.where(idx_f == e, tab_ref[f, e], 0.0)
        out_ref[...] = jax.nn.sigmoid(acc)

    return kernel


def _forward_impl(idx, scaled_tables, bias, *, field_sizes):
    """idx: [F, B] int32; scaled_tables: [F, E] f32 (w already folded); bias: [1] f32.
    Returns prob: [B] f32."""
    F, B = idx.shape

    # Batch tiling: lane-dense tiles (multiples of 8*128 elements).  Keep >=2 tiles
    # when the batch is big enough so the "parallel" axis can shard across v7x's
    # two TensorCores; 2048-wide tiles when they divide evenly (amortize step cost).
    B_pad = _round_up(max(B, 1), _MIN_TILE)
    if B_pad % 2048 == 0 and B_pad >= 4096:
        b_tile = 2048
    elif B_pad >= 2048:
        b_tile = 1024
    else:
        b_tile = B_pad
    b_lane = b_tile // _SUB
    grid = (B_pad // b_tile,)

    idx_p = jnp.pad(idx, ((0, 0), (0, B_pad - B)))           # pad batch with idx 0
    idx_r = idx_p.reshape(F, _SUB, B_pad // _SUB)            # batch -> (sublane, lane)

    # Per-step VMEM footprint: double-buffered idx + out tiles (tens of KiB).
    est = 4 * 2 * (F * b_tile + b_tile)
    vmem_limit = int(min(48 * 2**20, max(4 * 2**20, 2 * est)))

    cost = pl.CostEstimate(
        flops=int(3 * sum(field_sizes) * B_pad),              # compare/select/add chain
        transcendentals=int(B_pad),                           # sigmoid
        bytes_accessed=int(4 * F * B_pad                      # idx
                           + 4 * F * scaled_tables.shape[1]   # table, fetched once
                           + 4 * B_pad + 4),                  # out + bias
    )

    out = pl.pallas_call(
        _make_kernel(field_sizes),
        out_shape=jax.ShapeDtypeStruct((_SUB, B_pad // _SUB), jnp.float32),
        grid=grid,
        in_specs=[
            pl.BlockSpec(memory_space=pltpu.MemorySpace.SMEM),      # scaled table (F, E)
            pl.BlockSpec(memory_space=pltpu.MemorySpace.SMEM),      # bias (1,)
            pl.BlockSpec((F, _SUB, b_lane), lambda i: (0, 0, i)),   # idx tile
        ],
        out_specs=pl.BlockSpec((_SUB, b_lane), lambda i: (0, i)),
        compiler_params=pltpu.CompilerParams(
            dimension_semantics=("parallel",),
            vmem_limit_bytes=vmem_limit,
        ),
        cost_estimate=cost,
    )(scaled_tables, bias, idx_r)

    return out.reshape(B_pad)[:B]


def make_forward(field_sizes):
    """Returns a jitted forward(idx, scaled_tables, bias) for static per-field sizes."""
    field_sizes = tuple(int(s) for s in field_sizes)
    return jax.jit(functools.partial(_forward_impl, field_sizes=field_sizes))


def build_params(field_dims):
    """Replicates EmbeddingLR.__init__ (embedding weights = 1.0, linear weight = 1.0
    frozen, bias = 0.0) and folds the linear weight into the tables once, at init."""
    fields = list(field_dims.keys())
    F = len(fields)
    E = max(field_dims.values())
    tables = jnp.zeros((F, E), dtype=jnp.float32)
    for f, name in enumerate(fields):
        tables = tables.at[f, :field_dims[name]].set(1.0)    # emb.weight.fill_(1.0)
    w = jnp.ones((F,), dtype=jnp.float32)                    # linear.weight = 1.0 (frozen)
    bias = jnp.zeros((1,), dtype=jnp.float32)                # linear.bias   = 0.0
    scaled_tables = tables * w[:, None]                      # [F, E], w folded at init
    return fields, tables, w, bias, scaled_tables


if __name__ == "__main__":
    field_dims = {"device_id": 10, "gender": 3, "age": 8, "item_id": 16}
    batch = 8

    fields, tables, w, bias, scaled_tables = build_params(field_dims)
    F = len(fields)
    field_sizes = tuple(field_dims[name] for name in fields)

    # Deterministic per-field index vectors (dict of int tensors in torch),
    # stacked as [F, B].
    key = jax.random.PRNGKey(0)
    rows = []
    for name in fields:
        key, sub = jax.random.split(key)
        rows.append(jax.random.randint(sub, (batch,), 0, field_dims[name],
                                       dtype=jnp.int32))
    idx = jnp.stack(rows, axis=0)  # [F, B]

    forward = make_forward(field_sizes)
    prob = forward(idx, scaled_tables, bias)
    prob = jax.block_until_ready(prob)

    # Pure-JAX reference of the exact torch semantics.
    gathered_ref = jnp.stack([tables[f][idx[f]] for f in range(F)], axis=1)  # [B, F]
    logits_ref = gathered_ref @ w + bias[0]                                  # [B]
    prob_ref = jax.nn.sigmoid(logits_ref)

    assert prob.shape == (batch,)
    assert jnp.allclose(prob, prob_ref, atol=1e-6), (prob, prob_ref)
    print("KERNEL_OK")
</pallas_src>

<mosaic_0001>
module attributes {stable_mosaic.version = 11 : i64} {
  func.func @kernel(%arg0: i32, %arg1: memref<4x16xf32, #tpu.memory_space<smem>>, %arg2: memref<1xf32, #tpu.memory_space<smem>>, %arg3: memref<4x8x128xi32, #tpu.memory_space<vmem>>, %arg4: memref<8x128xf32, #tpu.memory_space<vmem>>) attributes {dimension_semantics = [#tpu.dimension_semantics<parallel>], iteration_bounds = array<i64: 1>, scalar_prefetch = 0 : i64, scratch_operands = 0 : i64, tpu.core_type = #tpu.core_type<tc>, window_params = [{transform_indices = @transform_0, window_bounds = array<i64: 4, 16>}, {transform_indices = @transform_1, window_bounds = array<i64: 1>}, {transform_indices = @transform_2, window_bounds = array<i64: 4, 8, 128>}, {transform_indices = @transform_3, window_bounds = array<i64: 8, 128>}]} {
    %c0 = arith.constant 0 : index
    %0 = memref.load %arg2[%c0] : memref<1xf32, #tpu.memory_space<smem>>
    %1 = vector.broadcast %0 : f32 to vector<8x128xf32>
    %c0_0 = arith.constant 0 : index
    %c0_1 = arith.constant 0 : index
    %c0_2 = arith.constant 0 : index
    %2 = vector.load %arg3[%c0_0, %c0_1, %c0_2] : memref<4x8x128xi32, #tpu.memory_space<vmem>>, vector<1x8x128xi32>
    %3 = vector.shape_cast %2 : vector<1x8x128xi32> to vector<8x128xi32>
    %c0_i32 = arith.constant 0 : i32
    %4 = vector.broadcast %c0_i32 : i32 to vector<8x128xi32>
    %5 = arith.cmpi eq, %3, %4 : vector<8x128xi32>
    %c0_3 = arith.constant 0 : index
    %c0_4 = arith.constant 0 : index
    %6 = memref.load %arg1[%c0_3, %c0_4] : memref<4x16xf32, #tpu.memory_space<smem>>
    %cst = arith.constant 0.000000e+00 : f32
    %7 = vector.broadcast %6 : f32 to vector<8x128xf32>
    %8 = vector.broadcast %cst : f32 to vector<8x128xf32>
    %9 = arith.select %5, %7, %8 : vector<8x128xi1>, vector<8x128xf32>
    %10 = arith.addf %1, %9 : vector<8x128xf32>
    %c1_i32 = arith.constant 1 : i32
    %11 = vector.broadcast %c1_i32 : i32 to vector<8x128xi32>
    %12 = arith.cmpi eq, %3, %11 : vector<8x128xi32>
    %c0_5 = arith.constant 0 : index
    %c1 = arith.constant 1 : index
    %13 = memref.load %arg1[%c0_5, %c1] : memref<4x16xf32, #tpu.memory_space<smem>>
    %cst_6 = arith.constant 0.000000e+00 : f32
    %14 = vector.broadcast %13 : f32 to vector<8x128xf32>
    %15 = vector.broadcast %cst_6 : f32 to vector<8x128xf32>
    %16 = arith.select %12, %14, %15 : vector<8x128xi1>, vector<8x128xf32>
    %17 = arith.addf %10, %16 : vector<8x128xf32>
    %c2_i32 = arith.constant 2 : i32
    %18 = vector.broadcast %c2_i32 : i32 to vector<8x128xi32>
    %19 = arith.cmpi eq, %3, %18 : vector<8x128xi32>
    %c0_7 = arith.constant 0 : index
    %c2 = arith.constant 2 : index
    %20 = memref.load %arg1[%c0_7, %c2] : memref<4x16xf32, #tpu.memory_space<smem>>
    %cst_8 = arith.constant 0.000000e+00 : f32
    %21 = vector.broadcast %20 : f32 to vector<8x128xf32>
    %22 = vector.broadcast %cst_8 : f32 to vector<8x128xf32>
    %23 = arith.select %19, %21, %22 : vector<8x128xi1>, vector<8x128xf32>
    %24 = arith.addf %17, %23 : vector<8x128xf32>
    %c3_i32 = arith.constant 3 : i32
    %25 = vector.broadcast %c3_i32 : i32 to vector<8x128xi32>
    %26 = arith.cmpi eq, %3, %25 : vector<8x128xi32>
    %c0_9 = arith.constant 0 : index
    %c3 = arith.constant 3 : index
    %27 = memref.load %arg1[%c0_9, %c3] : memref<4x16xf32, #tpu.memory_space<smem>>
    %cst_10 = arith.constant 0.000000e+00 : f32
    %28 = vector.broadcast %27 : f32 to vector<8x128xf32>
    %29 = vector.broadcast %cst_10 : f32 to vector<8x128xf32>
    %30 = arith.select %26, %28, %29 : vector<8x128xi1>, vector<8x128xf32>
    %31 = arith.addf %24, %30 : vector<8x128xf32>
    %c4_i32 = arith.constant 4 : i32
    %32 = vector.broadcast %c4_i32 : i32 to vector<8x128xi32>
    %33 = arith.cmpi eq, %3, %32 : vector<8x128xi32>
    %c0_11 = arith.constant 0 : index
    %c4 = arith.constant 4 : index
    %34 = memref.load %arg1[%c0_11, %c4] : memref<4x16xf32, #tpu.memory_space<smem>>
    %cst_12 = arith.constant 0.000000e+00 : f32
    %35 = vector.broadcast %34 : f32 to vector<8x128xf32>
    %36 = vector.broadcast %cst_12 : f32 to vector<8x128xf32>
    %37 = arith.select %33, %35, %36 : vector<8x128xi1>, vector<8x128xf32>
    %38 = arith.addf %31, %37 : vector<8x128xf32>
    %c5_i32 = arith.constant 5 : i32
    %39 = vector.broadcast %c5_i32 : i32 to vector<8x128xi32>
    %40 = arith.cmpi eq, %3, %39 : vector<8x128xi32>
    %c0_13 = arith.constant 0 : index
    %c5 = arith.constant 5 : index
    %41 = memref.load %arg1[%c0_13, %c5] : memref<4x16xf32, #tpu.memory_space<smem>>
    %cst_14 = arith.constant 0.000000e+00 : f32
    %42 = vector.broadcast %41 : f32 to vector<8x128xf32>
    %43 = vector.broadcast %cst_14 : f32 to vector<8x128xf32>
    %44 = arith.select %40, %42, %43 : vector<8x128xi1>, vector<8x128xf32>
    %45 = arith.addf %38, %44 : vector<8x128xf32>
    %c6_i32 = arith.constant 6 : i32
    %46 = vector.broadcast %c6_i32 : i32 to vector<8x128xi32>
    %47 = arith.cmpi eq, %3, %46 : vector<8x128xi32>
    %c0_15 = arith.constant 0 : index
    %c6 = arith.constant 6 : index
    %48 = memref.load %arg1[%c0_15, %c6] : memref<4x16xf32, #tpu.memory_space<smem>>
    %cst_16 = arith.constant 0.000000e+00 : f32
    %49 = vector.broadcast %48 : f32 to vector<8x128xf32>
    %50 = vector.broadcast %cst_16 : f32 to vector<8x128xf32>
    %51 = arith.select %47, %49, %50 : vector<8x128xi1>, vector<8x128xf32>
    %52 = arith.addf %45, %51 : vector<8x128xf32>
    %c7_i32 = arith.constant 7 : i32
    %53 = vector.broadcast %c7_i32 : i32 to vector<8x128xi32>
    %54 = arith.cmpi eq, %3, %53 : vector<8x128xi32>
    %c0_17 = arith.constant 0 : index
    %c7 = arith.constant 7 : index
    %55 = memref.load %arg1[%c0_17, %c7] : memref<4x16xf32, #tpu.memory_space<smem>>
    %cst_18 = arith.constant 0.000000e+00 : f32
    %56 = vector.broadcast %55 : f32 to vector<8x128xf32>
    %57 = vector.broadcast %cst_18 : f32 to vector<8x128xf32>
    %58 = arith.select %54, %56, %57 : vector<8x128xi1>, vector<8x128xf32>
    %59 = arith.addf %52, %58 : vector<8x128xf32>
    %c8_i32 = arith.constant 8 : i32
    %60 = vector.broadcast %c8_i32 : i32 to vector<8x128xi32>
    %61 = arith.cmpi eq, %3, %60 : vector<8x128xi32>
    %c0_19 = arith.constant 0 : index
    %c8 = arith.constant 8 : index
    %62 = memref.load %arg1[%c0_19, %c8] : memref<4x16xf32, #tpu.memory_space<smem>>
    %cst_20 = arith.constant 0.000000e+00 : f32
    %63 = vector.broadcast %62 : f32 to vector<8x128xf32>
    %64 = vector.broadcast %cst_20 : f32 to vector<8x128xf32>
    %65 = arith.select %61, %63, %64 : vector<8x128xi1>, vector<8x128xf32>
    %66 = arith.addf %59, %65 : vector<8x128xf32>
    %c9_i32 = arith.constant 9 : i32
    %67 = vector.broadcast %c9_i32 : i32 to vector<8x128xi32>
    %68 = arith.cmpi eq, %3, %67 : vector<8x128xi32>
    %c0_21 = arith.constant 0 : index
    %c9 = arith.constant 9 : index
    %69 = memref.load %arg1[%c0_21, %c9] : memref<4x16xf32, #tpu.memory_space<smem>>
    %cst_22 = arith.constant 0.000000e+00 : f32
    %70 = vector.broadcast %69 : f32 to vector<8x128xf32>
    %71 = vector.broadcast %cst_22 : f32 to vector<8x128xf32>
    %72 = arith.select %68, %70, %71 : vector<8x128xi1>, vector<8x128xf32>
    %73 = arith.addf %66, %72 : vector<8x128xf32>
    %c1_23 = arith.constant 1 : index
    %c0_24 = arith.constant 0 : index
    %c0_25 = arith.constant 0 : index
    %74 = vector.load %arg3[%c1_23, %c0_24, %c0_25] : memref<4x8x128xi32, #tpu.memory_space<vmem>>, vector<1x8x128xi32>
    %75 = vector.shape_cast %74 : vector<1x8x128xi32> to vector<8x128xi32>
    %c0_i32_26 = arith.constant 0 : i32
    %76 = vector.broadcast %c0_i32_26 : i32 to vector<8x128xi32>
    %77 = arith.cmpi eq, %75, %76 : vector<8x128xi32>
    %c1_27 = arith.constant 1 : index
    %c0_28 = arith.constant 0 : index
    %78 = memref.load %arg1[%c1_27, %c0_28] : memref<4x16xf32, #tpu.memory_space<smem>>
    %cst_29 = arith.constant 0.000000e+00 : f32
    %79 = vector.broadcast %78 : f32 to vector<8x128xf32>
    %80 = vector.broadcast %cst_29 : f32 to vector<8x128xf32>
    %81 = arith.select %77, %79, %80 : vector<8x128xi1>, vector<8x128xf32>
    %82 = arith.addf %73, %81 : vector<8x128xf32>
    %c1_i32_30 = arith.constant 1 : i32
    %83 = vector.broadcast %c1_i32_30 : i32 to vector<8x128xi32>
    %84 = arith.cmpi eq, %75, %83 : vector<8x128xi32>
    %c1_31 = arith.constant 1 : index
    %c1_32 = arith.constant 1 : index
    %85 = memref.load %arg1[%c1_31, %c1_32] : memref<4x16xf32, #tpu.memory_space<smem>>
    %cst_33 = arith.constant 0.000000e+00 : f32
    %86 = vector.broadcast %85 : f32 to vector<8x128xf32>
    %87 = vector.broadcast %cst_33 : f32 to vector<8x128xf32>
    %88 = arith.select %84, %86, %87 : vector<8x128xi1>, vector<8x128xf32>
    %89 = arith.addf %82, %88 : vector<8x128xf32>
    %c2_i32_34 = arith.constant 2 : i32
    %90 = vector.broadcast %c2_i32_34 : i32 to vector<8x128xi32>
    %91 = arith.cmpi eq, %75, %90 : vector<8x128xi32>
    %c1_35 = arith.constant 1 : index
    %c2_36 = arith.constant 2 : index
    %92 = memref.load %arg1[%c1_35, %c2_36] : memref<4x16xf32, #tpu.memory_space<smem>>
    %cst_37 = arith.constant 0.000000e+00 : f32
    %93 = vector.broadcast %92 : f32 to vector<8x128xf32>
    %94 = vector.broadcast %cst_37 : f32 to vector<8x128xf32>
    %95 = arith.select %91, %93, %94 : vector<8x128xi1>, vector<8x128xf32>
    %96 = arith.addf %89, %95 : vector<8x128xf32>
    %c2_38 = arith.constant 2 : index
    %c0_39 = arith.constant 0 : index
    %c0_40 = arith.constant 0 : index
    %97 = vector.load %arg3[%c2_38, %c0_39, %c0_40] : memref<4x8x128xi32, #tpu.memory_space<vmem>>, vector<1x8x128xi32>
    %98 = vector.shape_cast %97 : vector<1x8x128xi32> to vector<8x128xi32>
    %c0_i32_41 = arith.constant 0 : i32
    %99 = vector.broadcast %c0_i32_41 : i32 to vector<8x128xi32>
    %100 = arith.cmpi eq, %98, %99 : vector<8x128xi32>
    %c2_42 = arith.constant 2 : index
    %c0_43 = arith.constant 0 : index
    %101 = memref.load %arg1[%c2_42, %c0_43] : memref<4x16xf32, #tpu.memory_space<smem>>
    %cst_44 = arith.constant 0.000000e+00 : f32
    %102 = vector.broadcast %101 : f32 to vector<8x128xf32>
    %103 = vector.broadcast %cst_44 : f32 to vector<8x128xf32>
    %104 = arith.select %100, %102, %103 : vector<8x128xi1>, vector<8x128xf32>
    %105 = arith.addf %96, %104 : vector<8x128xf32>
    %c1_i32_45 = arith.constant 1 : i32
    %106 = vector.broadcast %c1_i32_45 : i32 to vector<8x128xi32>
    %107 = arith.cmpi eq, %98, %106 : vector<8x128xi32>
    %c2_46 = arith.constant 2 : index
    %c1_47 = arith.constant 1 : index
    %108 = memref.load %arg1[%c2_46, %c1_47] : memref<4x16xf32, #tpu.memory_space<smem>>
    %cst_48 = arith.constant 0.000000e+00 : f32
    %109 = vector.broadcast %108 : f32 to vector<8x128xf32>
    %110 = vector.broadcast %cst_48 : f32 to vector<8x128xf32>
    %111 = arith.select %107, %109, %110 : vector<8x128xi1>, vector<8x128xf32>
    %112 = arith.addf %105, %111 : vector<8x128xf32>
    %c2_i32_49 = arith.constant 2 : i32
    %113 = vector.broadcast %c2_i32_49 : i32 to vector<8x128xi32>
    %114 = arith.cmpi eq, %98, %113 : vector<8x128xi32>
    %c2_50 = arith.constant 2 : index
    %c2_51 = arith.constant 2 : index
    %115 = memref.load %arg1[%c2_50, %c2_51] : memref<4x16xf32, #tpu.memory_space<smem>>
    %cst_52 = arith.constant 0.000000e+00 : f32
    %116 = vector.broadcast %115 : f32 to vector<8x128xf32>
    %117 = vector.broadcast %cst_52 : f32 to vector<8x128xf32>
    %118 = arith.select %114, %116, %117 : vector<8x128xi1>, vector<8x128xf32>
    %119 = arith.addf %112, %118 : vector<8x128xf32>
    %c3_i32_53 = arith.constant 3 : i32
    %120 = vector.broadcast %c3_i32_53 : i32 to vector<8x128xi32>
    %121 = arith.cmpi eq, %98, %120 : vector<8x128xi32>
    %c2_54 = arith.constant 2 : index
    %c3_55 = arith.constant 3 : index
    %122 = memref.load %arg1[%c2_54, %c3_55] : memref<4x16xf32, #tpu.memory_space<smem>>
    %cst_56 = arith.constant 0.000000e+00 : f32
    %123 = vector.broadcast %122 : f32 to vector<8x128xf32>
    %124 = vector.broadcast %cst_56 : f32 to vector<8x128xf32>
    %125 = arith.select %121, %123, %124 : vector<8x128xi1>, vector<8x128xf32>
    %126 = arith.addf %119, %125 : vector<8x128xf32>
    %c4_i32_57 = arith.constant 4 : i32
    %127 = vector.broadcast %c4_i32_57 : i32 to vector<8x128xi32>
    %128 = arith.cmpi eq, %98, %127 : vector<8x128xi32>
    %c2_58 = arith.constant 2 : index
    %c4_59 = arith.constant 4 : index
    %129 = memref.load %arg1[%c2_58, %c4_59] : memref<4x16xf32, #tpu.memory_space<smem>>
    %cst_60 = arith.constant 0.000000e+00 : f32
    %130 = vector.broadcast %129 : f32 to vector<8x128xf32>
    %131 = vector.broadcast %cst_60 : f32 to vector<8x128xf32>
    %132 = arith.select %128, %130, %131 : vector<8x128xi1>, vector<8x128xf32>
    %133 = arith.addf %126, %132 : vector<8x128xf32>
    %c5_i32_61 = arith.constant 5 : i32
    %134 = vector.broadcast %c5_i32_61 : i32 to vector<8x128xi32>
    %135 = arith.cmpi eq, %98, %134 : vector<8x128xi32>
    %c2_62 = arith.constant 2 : index
    %c5_63 = arith.constant 5 : index
    %136 = memref.load %arg1[%c2_62, %c5_63] : memref<4x16xf32, #tpu.memory_space<smem>>
    %cst_64 = arith.constant 0.000000e+00 : f32
    %137 = vector.broadcast %136 : f32 to vector<8x128xf32>
    %138 = vector.broadcast %cst_64 : f32 to vector<8x128xf32>
    %139 = arith.select %135, %137, %138 : vector<8x128xi1>, vector<8x128xf32>
    %140 = arith.addf %133, %139 : vector<8x128xf32>
    %c6_i32_65 = arith.constant 6 : i32
    %141 = vector.broadcast %c6_i32_65 : i32 to vector<8x128xi32>
    %142 = arith.cmpi eq, %98, %141 : vector<8x128xi32>
    %c2_66 = arith.constant 2 : index
    %c6_67 = arith.constant 6 : index
    %143 = memref.load %arg1[%c2_66, %c6_67] : memref<4x16xf32, #tpu.memory_space<smem>>
    %cst_68 = arith.constant 0.000000e+00 : f32
    %144 = vector.broadcast %143 : f32 to vector<8x128xf32>
    %145 = vector.broadcast %cst_68 : f32 to vector<8x128xf32>
    %146 = arith.select %142, %144, %145 : vector<8x128xi1>, vector<8x128xf32>
    %147 = arith.addf %140, %146 : vector<8x128xf32>
    %c7_i32_69 = arith.constant 7 : i32
    %148 = vector.broadcast %c7_i32_69 : i32 to vector<8x128xi32>
    %149 = arith.cmpi eq, %98, %148 : vector<8x128xi32>
    %c2_70 = arith.constant 2 : index
    %c7_71 = arith.constant 7 : index
    %150 = memref.load %arg1[%c2_70, %c7_71] : memref<4x16xf32, #tpu.memory_space<smem>>
    %cst_72 = arith.constant 0.000000e+00 : f32
    %151 = vector.broadcast %150 : f32 to vector<8x128xf32>
    %152 = vector.broadcast %cst_72 : f32 to vector<8x128xf32>
    %153 = arith.select %149, %151, %152 : vector<8x128xi1>, vector<8x128xf32>
    %154 = arith.addf %147, %153 : vector<8x128xf32>
    %c3_73 = arith.constant 3 : index
    %c0_74 = arith.constant 0 : index
    %c0_75 = arith.constant 0 : index
    %155 = vector.load %arg3[%c3_73, %c0_74, %c0_75] : memref<4x8x128xi32, #tpu.memory_space<vmem>>, vector<1x8x128xi32>
    %156 = vector.shape_cast %155 : vector<1x8x128xi32> to vector<8x128xi32>
    %c0_i32_76 = arith.constant 0 : i32
    %157 = vector.broadcast %c0_i32_76 : i32 to vector<8x128xi32>
    %158 = arith.cmpi eq, %156, %157 : vector<8x128xi32>
    %c3_77 = arith.constant 3 : index
    %c0_78 = arith.constant 0 : index
    %159 = memref.load %arg1[%c3_77, %c0_78] : memref<4x16xf32, #tpu.memory_space<smem>>
    %cst_79 = arith.constant 0.000000e+00 : f32
    %160 = vector.broadcast %159 : f32 to vector<8x128xf32>
    %161 = vector.broadcast %cst_79 : f32 to vector<8x128xf32>
    %162 = arith.select %158, %160, %161 : vector<8x128xi1>, vector<8x128xf32>
    %163 = arith.addf %154, %162 : vector<8x128xf32>
    %c1_i32_80 = arith.constant 1 : i32
    %164 = vector.broadcast %c1_i32_80 : i32 to vector<8x128xi32>
    %165 = arith.cmpi eq, %156, %164 : vector<8x128xi32>
    %c3_81 = arith.constant 3 : index
    %c1_82 = arith.constant 1 : index
    %166 = memref.load %arg1[%c3_81, %c1_82] : memref<4x16xf32, #tpu.memory_space<smem>>
    %cst_83 = arith.constant 0.000000e+00 : f32
    %167 = vector.broadcast %166 : f32 to vector<8x128xf32>
    %168 = vector.broadcast %cst_83 : f32 to vector<8x128xf32>
    %169 = arith.select %165, %167, %168 : vector<8x128xi1>, vector<8x128xf32>
    %170 = arith.addf %163, %169 : vector<8x128xf32>
    %c2_i32_84 = arith.constant 2 : i32
    %171 = vector.broadcast %c2_i32_84 : i32 to vector<8x128xi32>
    %172 = arith.cmpi eq, %156, %171 : vector<8x128xi32>
    %c3_85 = arith.constant 3 : index
    %c2_86 = arith.constant 2 : index
    %173 = memref.load %arg1[%c3_85, %c2_86] : memref<4x16xf32, #tpu.memory_space<smem>>
    %cst_87 = arith.constant 0.000000e+00 : f32
    %174 = vector.broadcast %173 : f32 to vector<8x128xf32>
    %175 = vector.broadcast %cst_87 : f32 to vector<8x128xf32>
    %176 = arith.select %172, %174, %175 : vector<8x128xi1>, vector<8x128xf32>
    %177 = arith.addf %170, %176 : vector<8x128xf32>
    %c3_i32_88 = arith.constant 3 : i32
    %178 = vector.broadcast %c3_i32_88 : i32 to vector<8x128xi32>
    %179 = arith.cmpi eq, %156, %178 : vector<8x128xi32>
    %c3_89 = arith.constant 3 : index
    %c3_90 = arith.constant 3 : index
    %180 = memref.load %arg1[%c3_89, %c3_90] : memref<4x16xf32, #tpu.memory_space<smem>>
    %cst_91 = arith.constant 0.000000e+00 : f32
    %181 = vector.broadcast %180 : f32 to vector<8x128xf32>
    %182 = vector.broadcast %cst_91 : f32 to vector<8x128xf32>
    %183 = arith.select %179, %181, %182 : vector<8x128xi1>, vector<8x128xf32>
    %184 = arith.addf %177, %183 : vector<8x128xf32>
    %c4_i32_92 = arith.constant 4 : i32
    %185 = vector.broadcast %c4_i32_92 : i32 to vector<8x128xi32>
    %186 = arith.cmpi eq, %156, %185 : vector<8x128xi32>
    %c3_93 = arith.constant 3 : index
    %c4_94 = arith.constant 4 : index
    %187 = memref.load %arg1[%c3_93, %c4_94] : memref<4x16xf32, #tpu.memory_space<smem>>
    %cst_95 = arith.constant 0.000000e+00 : f32
    %188 = vector.broadcast %187 : f32 to vector<8x128xf32>
    %189 = vector.broadcast %cst_95 : f32 to vector<8x128xf32>
    %190 = arith.select %186, %188, %189 : vector<8x128xi1>, vector<8x128xf32>
    %191 = arith.addf %184, %190 : vector<8x128xf32>
    %c5_i32_96 = arith.constant 5 : i32
    %192 = vector.broadcast %c5_i32_96 : i32 to vector<8x128xi32>
    %193 = arith.cmpi eq, %156, %192 : vector<8x128xi32>
    %c3_97 = arith.constant 3 : index
    %c5_98 = arith.constant 5 : index
    %194 = memref.load %arg1[%c3_97, %c5_98] : memref<4x16xf32, #tpu.memory_space<smem>>
    %cst_99 = arith.constant 0.000000e+00 : f32
    %195 = vector.broadcast %194 : f32 to vector<8x128xf32>
    %196 = vector.broadcast %cst_99 : f32 to vector<8x128xf32>
    %197 = arith.select %193, %195, %196 : vector<8x128xi1>, vector<8x128xf32>
    %198 = arith.addf %191, %197 : vector<8x128xf32>
    %c6_i32_100 = arith.constant 6 : i32
    %199 = vector.broadcast %c6_i32_100 : i32 to vector<8x128xi32>
    %200 = arith.cmpi eq, %156, %199 : vector<8x128xi32>
    %c3_101 = arith.constant 3 : index
    %c6_102 = arith.constant 6 : index
    %201 = memref.load %arg1[%c3_101, %c6_102] : memref<4x16xf32, #tpu.memory_space<smem>>
    %cst_103 = arith.constant 0.000000e+00 : f32
    %202 = vector.broadcast %201 : f32 to vector<8x128xf32>
    %203 = vector.broadcast %cst_103 : f32 to vector<8x128xf32>
    %204 = arith.select %200, %202, %203 : vector<8x128xi1>, vector<8x128xf32>
    %205 = arith.addf %198, %204 : vector<8x128xf32>
    %c7_i32_104 = arith.constant 7 : i32
    %206 = vector.broadcast %c7_i32_104 : i32 to vector<8x128xi32>
    %207 = arith.cmpi eq, %156, %206 : vector<8x128xi32>
    %c3_105 = arith.constant 3 : index
    %c7_106 = arith.constant 7 : index
    %208 = memref.load %arg1[%c3_105, %c7_106] : memref<4x16xf32, #tpu.memory_space<smem>>
    %cst_107 = arith.constant 0.000000e+00 : f32
    %209 = vector.broadcast %208 : f32 to vector<8x128xf32>
    %210 = vector.broadcast %cst_107 : f32 to vector<8x128xf32>
    %211 = arith.select %207, %209, %210 : vector<8x128xi1>, vector<8x128xf32>
    %212 = arith.addf %205, %211 : vector<8x128xf32>
    %c8_i32_108 = arith.constant 8 : i32
    %213 = vector.broadcast %c8_i32_108 : i32 to vector<8x128xi32>
    %214 = arith.cmpi eq, %156, %213 : vector<8x128xi32>
    %c3_109 = arith.constant 3 : index
    %c8_110 = arith.constant 8 : index
    %215 = memref.load %arg1[%c3_109, %c8_110] : memref<4x16xf32, #tpu.memory_space<smem>>
    %cst_111 = arith.constant 0.000000e+00 : f32
    %216 = vector.broadcast %215 : f32 to vector<8x128xf32>
    %217 = vector.broadcast %cst_111 : f32 to vector<8x128xf32>
    %218 = arith.select %214, %216, %217 : vector<8x128xi1>, vector<8x128xf32>
    %219 = arith.addf %212, %218 : vector<8x128xf32>
    %c9_i32_112 = arith.constant 9 : i32
    %220 = vector.broadcast %c9_i32_112 : i32 to vector<8x128xi32>
    %221 = arith.cmpi eq, %156, %220 : vector<8x128xi32>
    %c3_113 = arith.constant 3 : index
    %c9_114 = arith.constant 9 : index
    %222 = memref.load %arg1[%c3_113, %c9_114] : memref<4x16xf32, #tpu.memory_space<smem>>
    %cst_115 = arith.constant 0.000000e+00 : f32
    %223 = vector.broadcast %222 : f32 to vector<8x128xf32>
    %224 = vector.broadcast %cst_115 : f32 to vector<8x128xf32>
    %225 = arith.select %221, %223, %224 : vector<8x128xi1>, vector<8x128xf32>
    %226 = arith.addf %219, %225 : vector<8x128xf32>
    %c10_i32 = arith.constant 10 : i32
    %227 = vector.broadcast %c10_i32 : i32 to vector<8x128xi32>
    %228 = arith.cmpi eq, %156, %227 : vector<8x128xi32>
    %c3_116 = arith.constant 3 : index
    %c10 = arith.constant 10 : index
    %229 = memref.load %arg1[%c3_116, %c10] : memref<4x16xf32, #tpu.memory_space<smem>>
    %cst_117 = arith.constant 0.000000e+00 : f32
    %230 = vector.broadcast %229 : f32 to vector<8x128xf32>
    %231 = vector.broadcast %cst_117 : f32 to vector<8x128xf32>
    %232 = arith.select %228, %230, %231 : vector<8x128xi1>, vector<8x128xf32>
    %233 = arith.addf %226, %232 : vector<8x128xf32>
    %c11_i32 = arith.constant 11 : i32
    %234 = vector.broadcast %c11_i32 : i32 to vector<8x128xi32>
    %235 = arith.cmpi eq, %156, %234 : vector<8x128xi32>
    %c3_118 = arith.constant 3 : index
    %c11 = arith.constant 11 : index
    %236 = memref.load %arg1[%c3_118, %c11] : memref<4x16xf32, #tpu.memory_space<smem>>
    %cst_119 = arith.constant 0.000000e+00 : f32
    %237 = vector.broadcast %236 : f32 to vector<8x128xf32>
    %238 = vector.broadcast %cst_119 : f32 to vector<8x128xf32>
    %239 = arith.select %235, %237, %238 : vector<8x128xi1>, vector<8x128xf32>
    %240 = arith.addf %233, %239 : vector<8x128xf32>
    %c12_i32 = arith.constant 12 : i32
    %241 = vector.broadcast %c12_i32 : i32 to vector<8x128xi32>
    %242 = arith.cmpi eq, %156, %241 : vector<8x128xi32>
    %c3_120 = arith.constant 3 : index
    %c12 = arith.constant 12 : index
    %243 = memref.load %arg1[%c3_120, %c12] : memref<4x16xf32, #tpu.memory_space<smem>>
    %cst_121 = arith.constant 0.000000e+00 : f32
    %244 = vector.broadcast %243 : f32 to vector<8x128xf32>
    %245 = vector.broadcast %cst_121 : f32 to vector<8x128xf32>
    %246 = arith.select %242, %244, %245 : vector<8x128xi1>, vector<8x128xf32>
    %247 = arith.addf %240, %246 : vector<8x128xf32>
    %c13_i32 = arith.constant 13 : i32
    %248 = vector.broadcast %c13_i32 : i32 to vector<8x128xi32>
    %249 = arith.cmpi eq, %156, %248 : vector<8x128xi32>
    %c3_122 = arith.constant 3 : index
    %c13 = arith.constant 13 : index
    %250 = memref.load %arg1[%c3_122, %c13] : memref<4x16xf32, #tpu.memory_space<smem>>
    %cst_123 = arith.constant 0.000000e+00 : f32
    %251 = vector.broadcast %250 : f32 to vector<8x128xf32>
    %252 = vector.broadcast %cst_123 : f32 to vector<8x128xf32>
    %253 = arith.select %249, %251, %252 : vector<8x128xi1>, vector<8x128xf32>
    %254 = arith.addf %247, %253 : vector<8x128xf32>
    %c14_i32 = arith.constant 14 : i32
    %255 = vector.broadcast %c14_i32 : i32 to vector<8x128xi32>
    %256 = arith.cmpi eq, %156, %255 : vector<8x128xi32>
    %c3_124 = arith.constant 3 : index
    %c14 = arith.constant 14 : index
    %257 = memref.load %arg1[%c3_124, %c14] : memref<4x16xf32, #tpu.memory_space<smem>>
    %cst_125 = arith.constant 0.000000e+00 : f32
    %258 = vector.broadcast %257 : f32 to vector<8x128xf32>
    %259 = vector.broadcast %cst_125 : f32 to vector<8x128xf32>
    %260 = arith.select %256, %258, %259 : vector<8x128xi1>, vector<8x128xf32>
    %261 = arith.addf %254, %260 : vector<8x128xf32>
    %c15_i32 = arith.constant 15 : i32
    %262 = vector.broadcast %c15_i32 : i32 to vector<8x128xi32>
    %263 = arith.cmpi eq, %156, %262 : vector<8x128xi32>
    %c3_126 = arith.constant 3 : index
    %c15 = arith.constant 15 : index
    %264 = memref.load %arg1[%c3_126, %c15] : memref<4x16xf32, #tpu.memory_space<smem>>
    %cst_127 = arith.constant 0.000000e+00 : f32
    %265 = vector.broadcast %264 : f32 to vector<8x128xf32>
    %266 = vector.broadcast %cst_127 : f32 to vector<8x128xf32>
    %267 = arith.select %263, %265, %266 : vector<8x128xi1>, vector<8x128xf32>
    %268 = arith.addf %261, %267 : vector<8x128xf32>
    %269 = arith.negf %268 : vector<8x128xf32>
    %270 = math.exp %269 : vector<8x128xf32>
    %cst_128 = arith.constant 1.000000e+00 : f32
    %271 = vector.broadcast %cst_128 : f32 to vector<8x128xf32>
    %272 = arith.addf %271, %270 : vector<8x128xf32>
    %273 = arith.divf %271, %272 : vector<8x128xf32>
    %c0_129 = arith.constant 0 : index
    %c0_130 = arith.constant 0 : index
    %274 = vector.load %arg4[%c0_129, %c0_130] : memref<8x128xf32, #tpu.memory_space<vmem>>, vector<8x128xf32>
    tpu.vector_store %arg4[%c0_129, %c0_130], %273 {strides = array<i32>} : memref<8x128xf32, #tpu.memory_space<vmem>>, vector<8x128xf32>,
    return
  }
  func.func @transform_0(%arg0: i32) -> (i32, i32) {
    %c0_i32 = arith.constant 0 : i32
    %c0_i32_0 = arith.constant 0 : i32
    %c0_i32_1 = arith.constant 0 : i32
    return %c0_i32, %c0_i32_0 : i32, i32
  }
  func.func @transform_1(%arg0: i32) -> i32 {
    %c0_i32 = arith.constant 0 : i32
    %c0_i32_0 = arith.constant 0 : i32
    return %c0_i32 : i32
  }
  func.func @transform_2(%arg0: i32) -> (i32, i32, i32) {
    %c0_i32 = arith.constant 0 : i32
    %c0_i32_0 = arith.constant 0 : i32
    %c0_i32_1 = arith.constant 0 : i32
    return %c0_i32, %c0_i32_0, %arg0 : i32, i32, i32
  }
  func.func @transform_3(%arg0: i32) -> (i32, i32) {
    %c0_i32 = arith.constant 0 : i32
    %c0_i32_0 = arith.constant 0 : i32
    return %c0_i32, %arg0 : i32, i32
  }
}

</mosaic_0001>

<bundles_post_ra>
// kernel: _forward_impl.1
= control target key start
LH: loop header
LB: loop body
LE: loop exit
PB: predicated region body
PF: predicated region fallthrough
CT: control target
= control target key end

     0   :  { %9 = vsyncpa [#allocation4], 0  ;;  %s353_s0 = inlined_call_operand.vmem [shape: f32[4,16], index: 0, kind: input, shape index: {}]   ;;  %s354_s1 = inlined_call_operand.<no memory space> [shape: f32[1], index: 1, kind: input, shape index: {}]   ;;  %s355_s2 = inlined_call_operand.vmem [shape: s32[4,8,128], index: 2, kind: input, shape index: {}]   ;;  %s356_s3 = inlined_call_operand.vmem [shape: f32[8,128], index: 3, kind: output, shape index: {}]  }
   0x1   :  { %s16_s14 = sshll.u32 %s353_s0, 4  ;;  %s17_s14 = int_to_ptr.vmem [resolvable:$true] %s16_s14 }
   0x2   :  { %s279_s15 = scalar_lea.vmem %s17_s14, 64  ;;  %p284_p1 = scmp.lt.s32.totalorder %s17_s14, %s17_s14 }
   0x3   :  { %p280_p0 = scmp.ne.s32.totalorder %s17_s14, %s279_s15  ;;  %p285_p2 = scmp.lt.s32.totalorder %s279_s15, %s279_s15 }
   0x5   :  { %p286_p3 = por %p285_p2, %p284_p1 }
   0x7   :  { %p287_p4 = pnand %p286_p3, %p280_p0 }
   0x9   :  { %290 = shalt.err (!%p287_p4)
}
   0xa   :  { %s293_s16 = smov [#allocation3]  }
   0xb   :  { %19 = dma.vmem_to_smem %s17_s14, 64, %s293_s16, [#allocation4]  }
   0xc   :  { %291 = dma.done.wait [#allocation4], 64  }
   0xd   :  { %292 = vsyncadd [#allocation4], 4294967232 }
   0xe   :  { %27 = sfence }
   0xf   :  { %s32_s17 = sld [smem:[#allocation3]]  ;;  %s234_s18 = sld [smem:[#allocation3 + $0x1]]  ;;  %v30_v0 = vld [vmem:[%s355_s2] sm:$0xff]  ;;  %v29_v1 = vstv %s354_s1  ;;  %v243_v25 = vld [vmem:[%s355_s2 + $0x8] sm:$0xff]  ;;  %v247_v35 = vld [vmem:[%s355_s2 + $0x10] sm:$0xff] }
  0x10   :  { %s235_s0 = sld [smem:[#allocation3 + $0x2]]  ;;  %s236_s21 = sld [smem:[#allocation3 + $0x3]]  ;;  %vm31_vm0 = vcmp.eq.s32.totalorder %v30_v0, 0  ;;  %vm36_vm1 = vcmp.eq.s32.totalorder %v30_v0, 1  ;;  %vm41_vm2 = vcmp.eq.s32.totalorder %v30_v0, 2  ;;  %vm46_vm3 = vcmp.eq.s32.totalorder %v30_v0, 3 }
  0x11   :  { %s237_s22 = sld [smem:[#allocation3 + $0x4]]  ;;  %s238_s23 = sld [smem:[#allocation3 + $0x5]]  ;;  %vm51_vm4 = vcmp.eq.s32.totalorder %v30_v0, 4  ;;  %vm56_vm5 = vcmp.eq.s32.totalorder %v30_v0, 5  ;;  %vm61_vm6 = vcmp.eq.s32.totalorder %v30_v0, 6  ;;  %vm66_vm7 = vcmp.eq.s32.totalorder %v30_v0, 7 }
  0x12   :  { %s239_s26 = sld [smem:[#allocation3 + $0x6]]  ;;  %s240_s27 = sld [smem:[#allocation3 + $0x7]]  ;;  %vm71_vm8 = vcmp.eq.s32.totalorder %v30_v0, 8  ;;  %vm76_vm9 = vcmp.eq.s32.totalorder %v30_v0, 9  ;;  %vm83_vm10 = vcmp.eq.s32.totalorder %v243_v25, 0  ;;  %vm88_vm11 = vcmp.eq.s32.totalorder %v243_v25, 1 }
  0x13   :  { %s241_s28 = sld [smem:[#allocation3 + $0x8]]  ;;  %s242_s1 = sld [smem:[#allocation3 + $0x9]]  ;;  %vm93_vm12 = vcmp.eq.s32.totalorder %v243_v25, 2  ;;  %vm100_vm13 = vcmp.eq.s32.totalorder %v247_v35, 0  ;;  %vm105_vm14 = vcmp.eq.s32.totalorder %v247_v35, 1  ;;  %vm110_vm15 = vcmp.eq.s32.totalorder %v247_v35, 2 }
  0x14   :  { %s244_s29 = sld [smem:[#allocation3 + $0x80]]  ;;  %s245_s30 = sld [smem:[#allocation3 + $0x81]]  ;;  %v332_v60 = vld [vmem:[%s355_s2 + $0x18] sm:$0xff] }
  0x15   :  { %v33_v2 = vstv %s32_s17  ;;  %v38_v3 = vstv %s234_s18  ;;  %s246_s4 = sld [smem:[#allocation3 + $0x82]]  ;;  %s248_s7 = sld [smem:[#allocation3 + $0x100]] }
  0x16   :  { %v34_v4 = vsel %vm31_vm0, %v33_v2, 0.0  ;;  %v39_v5 = vsel %vm36_vm1, %v38_v3, 0.0  ;;  %v43_v6 = vstv %s235_s0  ;;  %v48_v8 = vstv %s236_s21  ;;  %s249_s8 = sld [smem:[#allocation3 + $0x101]]  ;;  %s250_s9 = sld [smem:[#allocation3 + $0x102]] }
  0x17   :  { %v35_v7 = vadd.f32 %v34_v4, %v29_v1  ;;  %v44_v9 = vsel %vm41_vm2, %v43_v6, 0.0  ;;  %v53_v11 = vstv %s237_s22  ;;  %v49_v12 = vsel %vm46_vm3, %v48_v8, 0.0  ;;  %s251_s12 = sld [smem:[#allocation3 + $0x103]]  ;;  %s252_s13 = sld [smem:[#allocation3 + $0x104]] }
  0x18   :  { %v58_v14 = vstv %s238_s23  ;;  %v54_v15 = vsel %vm51_vm4, %v53_v11, 0.0  ;;  %v63_v17 = vstv %s239_s26  ;;  %v68_v20 = vstv %s240_s27  ;;  %s253_s14 = sld [smem:[#allocation3 + $0x105]]  ;;  %s254_s15 = sld [smem:[#allocation3 + $0x106]] }
  0x19   :  { %v40_v10 = vadd.f32 %v39_v5, %v35_v7  ;;  %v59_v18 = vsel %vm56_vm5, %v58_v14, 0.0  ;;  %v64_v21 = vsel %vm61_vm6, %v63_v17, 0.0  ;;  %v73_v23 = vstv %s241_s28  ;;  %s255_s16 = sld [smem:[#allocation3 + $0x107]]  ;;  %s257_s17 = sld [smem:[#allocation3 + $0x180]] }
  0x1a   :  { %v69_v24 = vsel %vm66_vm7, %v68_v20, 0.0  ;;  %v78_v27 = vstv %s242_s1  ;;  %v74_v28 = vsel %vm71_vm8, %v73_v23, 0.0  ;;  %v85_v30 = vstv %s244_s29  ;;  %s258_s18 = sld [smem:[#allocation3 + $0x181]]  ;;  %s259_s19 = sld [smem:[#allocation3 + $0x182]] }
  0x1b   :  { %v45_v13 = vadd.f32 %v44_v9, %v40_v10  ;;  %v79_v31 = vsel %vm76_vm9, %v78_v27, 0.0  ;;  %v90_v33 = vstv %s245_s30  ;;  %v86_v34 = vsel %vm83_vm10, %v85_v30, 0.0  ;;  %s260_s21 = sld [smem:[#allocation3 + $0x183]]  ;;  %s261_s22 = sld [smem:[#allocation3 + $0x184]] }
  0x1c   :  { %v95_v37 = vstv %s246_s4  ;;  %v91_v38 = vsel %vm88_vm11, %v90_v33, 0.0  ;;  %v102_v40 = vstv %s248_s7  ;;  %v107_v43 = vstv %s249_s8  ;;  %s262_s23 = sld [smem:[#allocation3 + $0x185]]  ;;  %s263_s2 = sld [smem:[#allocation3 + $0x186]] }
  0x1d   :  { %v50_v16 = vadd.f32 %v49_v12, %v45_v13  ;;  %v96_v41 = vsel %vm93_vm12, %v95_v37, 0.0  ;;  %v103_v44 = vsel %vm100_vm13, %v102_v40, 0.0  ;;  %v112_v46 = vstv %s250_s9  ;;  %s264_s24 = sld [smem:[#allocation3 + $0x187]]  ;;  %s265_s25 = sld [smem:[#allocation3 + $0x188]] }
  0x1e   :  { %v108_v47 = vsel %vm105_vm14, %v107_v43, 0.0  ;;  %vm115_vm0 = vcmp.eq.s32.totalorder %v247_v35, 3  ;;  %v117_v49 = vstv %s251_s12  ;;  %v113_v50 = vsel %vm110_vm15, %v112_v46, 0.0  ;;  %s266_s26 = sld [smem:[#allocation3 + $0x189]]  ;;  %s267_s27 = sld [smem:[#allocation3 + $0x18a]] }
  0x1f   :  { %v55_v19 = vadd.f32 %v54_v15, %v50_v16  ;;  %vm120_vm1 = vcmp.eq.s32.totalorder %v247_v35, 4  ;;  %v122_v52 = vstv %s252_s13  ;;  %v118_v53 = vsel %vm115_vm0, %v117_v49, 0.0  ;;  %s268_s28 = sld [smem:[#allocation3 + $0x18b]]  ;;  %s269_s1 = sld [smem:[#allocation3 + $0x18c]] }
  0x20   :  { %vm125_vm2 = vcmp.eq.s32.totalorder %v247_v35, 5  ;;  %v127_v55 = vstv %s253_s14  ;;  %v123_v56 = vsel %vm120_vm1, %v122_v52, 0.0  ;;  %vm130_vm3 = vcmp.eq.s32.totalorder %v247_v35, 6  ;;  %s270_s29 = sld [smem:[#allocation3 + $0x18d]]  ;;  %s271_s30 = sld [smem:[#allocation3 + $0x18e]] }
  0x21   :  { %v60_v22 = vadd.f32 %v59_v18, %v55_v19  ;;  %v132_v58 = vstv %s254_s15  ;;  %v128_v59 = vsel %vm125_vm2, %v127_v55, 0.0  ;;  %vm135_vm4 = vcmp.eq.s32.totalorder %v247_v35, 7  ;;  %s272_s4 = sld [smem:[#allocation3 + $0x18f]] }
  0x22   :  { %v137_v62 = vstv %s255_s16  ;;  %v133_v63 = vsel %vm130_vm3, %v132_v58, 0.0  ;;  %vm142_vm5 = vcmp.eq.s32.totalorder %v332_v60, 0  ;;  %v144_v1 = vstv %s257_s17 }
  0x23   :  { %v65_v26 = vadd.f32 %v64_v21, %v60_v22  ;;  %v138_v2 = vsel %vm135_vm4, %v137_v62, 0.0  ;;  %vm147_vm6 = vcmp.eq.s32.totalorder %v332_v60, 1  ;;  %v149_v4 = vstv %s258_s18 }
  0x24   :  { %v145_v5 = vsel %vm142_vm5, %v144_v1, 0.0  ;;  %vm152_vm7 = vcmp.eq.s32.totalorder %v332_v60, 2  ;;  %v154_v7 = vstv %s259_s19  ;;  %v150_v8 = vsel %vm147_vm6, %v149_v4, 0.0 }
  0x25   :  { %v70_v29 = vadd.f32 %v69_v24, %v65_v26  ;;  %vm157_vm8 = vcmp.eq.s32.totalorder %v332_v60, 3  ;;  %v159_v10 = vstv %s260_s21  ;;  %v155_v11 = vsel %vm152_vm7, %v154_v7, 0.0 }
  0x26   :  { %vm162_vm9 = vcmp.eq.s32.totalorder %v332_v60, 4  ;;  %v164_v13 = vstv %s261_s22  ;;  %v160_v14 = vsel %vm157_vm8, %v159_v10, 0.0  ;;  %vm167_vm10 = vcmp.eq.s32.totalorder %v332_v60, 5 }
  0x27   :  { %v75_v32 = vadd.f32 %v74_v28, %v70_v29  ;;  %v169_v16 = vstv %s262_s23  ;;  %v165_v17 = vsel %vm162_vm9, %v164_v13, 0.0  ;;  %vm172_vm11 = vcmp.eq.s32.totalorder %v332_v60, 6 }
  0x28   :  { %v174_v19 = vstv %s263_s2  ;;  %v170_v20 = vsel %vm167_vm10, %v169_v16, 0.0  ;;  %vm177_vm12 = vcmp.eq.s32.totalorder %v332_v60, 7  ;;  %v179_v22 = vstv %s264_s24 }
  0x29   :  { %v80_v36 = vadd.f32 %v79_v31, %v75_v32  ;;  %v175_v23 = vsel %vm172_vm11, %v174_v19, 0.0  ;;  %vm182_vm13 = vcmp.eq.s32.totalorder %v332_v60, 8  ;;  %v184_v25 = vstv %s265_s25 }
  0x2a   :  { %v180_v26 = vsel %vm177_vm12, %v179_v22, 0.0  ;;  %vm187_vm14 = vcmp.eq.s32.totalorder %v332_v60, 9  ;;  %v189_v28 = vstv %s266_s26  ;;  %v185_v29 = vsel %vm182_vm13, %v184_v25, 0.0 }
  0x2b   :  { %v87_v39 = vadd.f32 %v86_v34, %v80_v36  ;;  %vm192_vm15 = vcmp.eq.s32.totalorder %v332_v60, 10  ;;  %v194_v31 = vstv %s267_s27  ;;  %v190_v32 = vsel %vm187_vm14, %v189_v28, 0.0 }
  0x2c   :  { %vm197_vm0 = vcmp.eq.s32.totalorder %v332_v60, 11  ;;  %v199_v34 = vstv %s268_s28  ;;  %v195_v35 = vsel %vm192_vm15, %v194_v31, 0.0  ;;  %vm202_vm1 = vcmp.eq.s32.totalorder %v332_v60, 12 }
  0x2d   :  { %v92_v42 = vadd.f32 %v91_v38, %v87_v39  ;;  %v204_v37 = vstv %s269_s1  ;;  %v200_v38 = vsel %vm197_vm0, %v199_v34, 0.0  ;;  %vm207_vm2 = vcmp.eq.s32.totalorder %v332_v60, 13 }
  0x2e   :  { %v209_v40 = vstv %s270_s29  ;;  %vm212_vm3 = vcmp.eq.s32.totalorder %v332_v60, 14  ;;  %v214_v43 = vstv %s271_s30  ;;  %vm217_vm4 = vcmp.eq.s32.totalorder %v332_v60, 15 }
  0x2f   :  { %v97_v45 = vadd.f32 %v96_v41, %v92_v42  ;;  %v205_v41 = vsel %vm202_vm1, %v204_v37, 0.0  ;;  %v219_v46 = vstv %s272_s4 }
  0x30   :  { %v220_v49 = vsel %vm217_vm4, %v219_v46, 0.0 }
  0x31   :  { %v104_v48 = vadd.f32 %v103_v44, %v97_v45  ;;  %v210_v44 = vsel %vm207_vm2, %v209_v40, 0.0 }
  0x33   :  { %v109_v51 = vadd.f32 %v108_v47, %v104_v48  ;;  %v215_v47 = vsel %vm212_vm3, %v214_v43, 0.0 }
  0x35   :  { %v114_v54 = vadd.f32 %v113_v50, %v109_v51 }
  0x37   :  { %v119_v57 = vadd.f32 %v118_v53, %v114_v54 }
  0x39   :  { %v124_v61 = vadd.f32 %v123_v56, %v119_v57 }
  0x3b   :  { %v129_v0 = vadd.f32 %v128_v59, %v124_v61 }
  0x3d   :  { %v134_v3 = vadd.f32 %v133_v63, %v129_v0 }
  0x3f   :  { %v139_v6 = vadd.f32 %v138_v2, %v134_v3 }
  0x41   :  { %v146_v9 = vadd.f32 %v145_v5, %v139_v6 }
  0x43   :  { %v151_v12 = vadd.f32 %v150_v8, %v146_v9 }
  0x45   :  { %v156_v15 = vadd.f32 %v155_v11, %v151_v12 }
  0x47   :  { %v161_v18 = vadd.f32 %v160_v14, %v156_v15 }
  0x49   :  { %v166_v21 = vadd.f32 %v165_v17, %v161_v18 }
  0x4b   :  { %v171_v24 = vadd.f32 %v170_v20, %v166_v21 }
  0x4d   :  { %v176_v27 = vadd.f32 %v175_v23, %v171_v24 }
  0x4f   :  { %v181_v30 = vadd.f32 %v180_v26, %v176_v27 }
  0x51   :  { %v186_v33 = vadd.f32 %v185_v29, %v181_v30 }
  0x53   :  { %v191_v36 = vadd.f32 %v190_v32, %v186_v33 }
  0x55   :  { %v196_v39 = vadd.f32 %v195_v35, %v191_v36 }
  0x57   :  { %v201_v42 = vadd.f32 %v200_v38, %v196_v39 }
  0x59   :  { %v206_v45 = vadd.f32 %v205_v41, %v201_v42 }
  0x5b   :  { %v211_v48 = vadd.f32 %v210_v44, %v206_v45 }
  0x5d   :  { %v216_v50 = vadd.f32 %v215_v47, %v211_v48 }
  0x5f   :  { %v221_v51 = vadd.f32 %v220_v49, %v216_v50 }
  0x61   :  { %v273_v52 = vmul.f32 -1.442695, %v221_v51 }
  0x63   :  { %275 = vpow2.f32 %v273_v52 }
  0x6d   :  { %v276_v53 = vpop.eup %275 }
  0x6e   :  { %v225_v54 = vadd.f32 1.0, %v276_v53 }
  0x70   :  { %277 = vrcp.f32 %v225_v54 }
  0x7a   :  { %v278_v55 = vpop.eup %277 }
  0x7b   :  { %228 = vst [vmem:[%s356_s3] sm:$0xff] %v278_v55 }
  0x7c   :  { %233 = vsyncpa [#allocation4], 1 }

</bundles_post_ra>
